<compile_context>
chip_gen: v7x
topology: tpu7x:2x2x1
jax: 0.10.0
libtpu: 0.0.40
codegen_flags: <defaults>
</compile_context>

<pallas_src>
import jax
import jax.numpy as jnp
from jax.experimental import pallas as pl
from jax.experimental.pallas import tpu as pltpu

IN1, OUT1 = 36, 252     # first Linear
IN2, OUT2 = 252, 18     # second Linear
H_PAD = 256             # padded hidden width (2 x 128 lanes)
N_PAD = 128             # padded output width (1 x 128 lanes)


def combine_kernel(x_ref, w1_ref, b1_ref, w2_ref, b2_ref, o_ref):
    # First linear + ReLU (MXU matmul, f32 accumulation).
    h = jnp.dot(x_ref[...], w1_ref[...], preferred_element_type=jnp.float32)
    h = h + b1_ref[...]            # (TB, 256) + (1, 256) broadcast
    h = jnp.maximum(h, 0.0)        # ReLU

    # Second linear + Sigmoid, lane-dense 128-wide output tile.
    z = jnp.dot(h, w2_ref[...], preferred_element_type=jnp.float32)
    z = z + b2_ref[...]            # (TB, 128) + (1, 128) broadcast
    o_ref[...] = jax.nn.sigmoid(z).astype(o_ref.dtype)


def combine_forward(x, w1, b1, w2, b2, *, block_rows=512):
    """x: (B, 36) f32.  w1: (36, 252), b1: (1, 252), w2: (252, 18), b2: (1, 18)."""
    B, K = x.shape
    H = w1.shape[1]
    N = w2.shape[1]

    # --- zero-pad params to lane-dense widths (numerically exact) ---------
    w1p = jnp.zeros((K, H_PAD), w1.dtype).at[:, :H].set(w1)
    b1p = jnp.zeros((1, H_PAD), b1.dtype).at[:, :H].set(b1)
    w2p = jnp.zeros((H_PAD, N_PAD), w2.dtype).at[:H, :N].set(w2)
    b2p = jnp.zeros((1, N_PAD), b2.dtype).at[:, :N].set(b2)

    # --- choose row tile and pad batch to a multiple of it ----------------
    TB = block_rows
    if B < TB:
        TB = max(8, ((B + 7) // 8) * 8)          # single tile, sublane-aligned
    n_tiles = pl.cdiv(B, TB)
    Bp = n_tiles * TB
    xp = x if Bp == B else jnp.zeros((Bp, K), x.dtype).at[:B].set(x)

    out_padded = pl.pallas_call(
        combine_kernel,
        out_shape=jax.ShapeDtypeStruct((Bp, N_PAD), jnp.float32),
        grid=(n_tiles,),
        in_specs=[
            pl.BlockSpec((TB, K), lambda i: (i, 0)),          # x row tile
            pl.BlockSpec((K, H_PAD), lambda i: (0, 0)),       # w1 (resident)
            pl.BlockSpec((1, H_PAD), lambda i: (0, 0)),       # b1 (resident)
            pl.BlockSpec((H_PAD, N_PAD), lambda i: (0, 0)),   # w2 (resident)
            pl.BlockSpec((1, N_PAD), lambda i: (0, 0)),       # b2 (resident)
        ],
        out_specs=pl.BlockSpec((TB, N_PAD), lambda i: (i, 0)),
        compiler_params=pltpu.CompilerParams(
            dimension_semantics=("parallel",)),
    )(xp, w1p, b1p, w2p, b2p)

    # Slice away batch padding and the padded output lanes.
    return out_padded[:B, :N]


def init_params(key):
    """Deterministic init mimicking PyTorch's default Linear init
    (uniform in +-1/sqrt(fan_in)); weights stored as (in, out)."""
    k1, k2, k3, k4 = jax.random.split(key, 4)
    bound1 = 1.0 / jnp.sqrt(IN1)
    bound2 = 1.0 / jnp.sqrt(IN2)
    w1 = jax.random.uniform(k1, (IN1, OUT1), jnp.float32, -bound1, bound1)
    b1 = jax.random.uniform(k2, (1, OUT1), jnp.float32, -bound1, bound1)
    w2 = jax.random.uniform(k3, (IN2, OUT2), jnp.float32, -bound2, bound2)
    b2 = jax.random.uniform(k4, (1, OUT2), jnp.float32, -bound2, bound2)
    return w1, b1, w2, b2


def _reference(x, w1, b1, w2, b2):
    h = jnp.maximum(x @ w1 + b1, 0.0)
    return jax.nn.sigmoid(h @ w2 + b2)


if __name__ == "__main__":
    key = jax.random.PRNGKey(0)
    kx, kx2, kp = jax.random.split(key, 3)
    w1, b1, w2, b2 = init_params(kp)

    # Small-batch check (single grid step).
    B = 8
    x = jax.random.normal(kx, (B, IN1), jnp.float32)
    out = jax.block_until_ready(combine_forward(x, w1, b1, w2, b2))
    ref = _reference(x, w1, b1, w2, b2)
    assert out.shape == (B, OUT2)
    assert jnp.allclose(out, ref, atol=1e-5, rtol=1e-5)

    # Multi-tile check (exercises the pipelined batch grid + padding path).
    B2 = 600  # not a multiple of the row tile -> exercises batch padding
    x2 = jax.random.normal(kx2, (B2, IN1), jnp.float32)
    out2 = jax.block_until_ready(
        combine_forward(x2, w1, b1, w2, b2, block_rows=256))
    ref2 = _reference(x2, w1, b1, w2, b2)
    assert out2.shape == (B2, OUT2)
    assert jnp.allclose(out2, ref2, atol=1e-5, rtol=1e-5)

    print("KERNEL_OK")
</pallas_src>

<mosaic_0001>
module attributes {stable_mosaic.version = 11 : i64} {
  func.func @combine_kernel(%arg0: i32, %arg1: memref<8x36xf32, #tpu.memory_space<vmem>>, %arg2: memref<36x256xf32, #tpu.memory_space<vmem>>, %arg3: memref<1x256xf32, #tpu.memory_space<vmem>>, %arg4: memref<256x128xf32, #tpu.memory_space<vmem>>, %arg5: memref<1x128xf32, #tpu.memory_space<vmem>>, %arg6: memref<8x128xf32, #tpu.memory_space<vmem>>) attributes {dimension_semantics = [#tpu.dimension_semantics<parallel>], iteration_bounds = array<i64: 1>, scalar_prefetch = 0 : i64, scratch_operands = 0 : i64, tpu.core_type = #tpu.core_type<tc>, window_params = [{transform_indices = @transform_0, window_bounds = array<i64: 8, 36>}, {pipeline_mode = #tpu.pipeline_mode<synchronous>, transform_indices = @transform_1, window_bounds = array<i64: 36, 256>}, {pipeline_mode = #tpu.pipeline_mode<synchronous>, transform_indices = @transform_2, window_bounds = array<i64: 1, 256>}, {pipeline_mode = #tpu.pipeline_mode<synchronous>, transform_indices = @transform_3, window_bounds = array<i64: 256, 128>}, {pipeline_mode = #tpu.pipeline_mode<synchronous>, transform_indices = @transform_4, window_bounds = array<i64: 1, 128>}, {transform_indices = @transform_5, window_bounds = array<i64: 8, 128>}]} {
    %c0 = arith.constant 0 : index
    %c0_0 = arith.constant 0 : index
    %0 = vector.load %arg1[%c0, %c0_0] : memref<8x36xf32, #tpu.memory_space<vmem>>, vector<8x36xf32>
    %c0_1 = arith.constant 0 : index
    %c0_2 = arith.constant 0 : index
    %1 = vector.load %arg2[%c0_1, %c0_2] : memref<36x256xf32, #tpu.memory_space<vmem>>, vector<36x256xf32>
    %cst = arith.constant dense<0.000000e+00> : vector<8x256xf32>
    %2 = tpu.matmul %0, %1, %cst {dimension_numbers = #tpu.dot_dimension_numbers<[1], [0], [0], [1], [0, 0, 1, 1], [], []>} : vector<8x36xf32>, vector<36x256xf32>, vector<8x256xf32> -> vector<8x256xf32>
    %c0_3 = arith.constant 0 : index
    %c0_4 = arith.constant 0 : index
    %3 = vector.load %arg3[%c0_3, %c0_4] : memref<1x256xf32, #tpu.memory_space<vmem>>, vector<1x256xf32>
    %4 = vector.broadcast %3 : vector<1x256xf32> to vector<8x256xf32>
    %5 = arith.addf %2, %4 : vector<8x256xf32>
    %cst_5 = arith.constant 0.000000e+00 : f32
    %6 = vector.broadcast %cst_5 : f32 to vector<8x256xf32>
    %7 = arith.maximumf %5, %6 : vector<8x256xf32>
    %c0_6 = arith.constant 0 : index
    %c0_7 = arith.constant 0 : index
    %8 = vector.load %arg4[%c0_6, %c0_7] : memref<256x128xf32, #tpu.memory_space<vmem>>, vector<256x128xf32>
    %cst_8 = arith.constant dense<0.000000e+00> : vector<8x128xf32>
    %9 = tpu.matmul %7, %8, %cst_8 {dimension_numbers = #tpu.dot_dimension_numbers<[1], [0], [0], [1], [0, 0, 1, 1], [], []>} : vector<8x256xf32>, vector<256x128xf32>, vector<8x128xf32> -> vector<8x128xf32>
    %c0_9 = arith.constant 0 : index
    %c0_10 = arith.constant 0 : index
    %10 = vector.load %arg5[%c0_9, %c0_10] : memref<1x128xf32, #tpu.memory_space<vmem>>, vector<1x128xf32>
    %11 = vector.broadcast %10 : vector<1x128xf32> to vector<8x128xf32>
    %12 = arith.addf %9, %11 : vector<8x128xf32>
    %13 = arith.negf %12 : vector<8x128xf32>
    %14 = math.exp %13 : vector<8x128xf32>
    %cst_11 = arith.constant 1.000000e+00 : f32
    %15 = vector.broadcast %cst_11 : f32 to vector<8x128xf32>
    %16 = arith.addf %15, %14 : vector<8x128xf32>
    %17 = arith.divf %15, %16 : vector<8x128xf32>
    %c0_12 = arith.constant 0 : index
    %c0_13 = arith.constant 0 : index
    %18 = vector.load %arg6[%c0_12, %c0_13] : memref<8x128xf32, #tpu.memory_space<vmem>>, vector<8x128xf32>
    tpu.vector_store %arg6[%c0_12, %c0_13], %17 {strides = array<i32>} : memref<8x128xf32, #tpu.memory_space<vmem>>, vector<8x128xf32>,
    return
  }
  func.func @transform_0(%arg0: i32) -> (i32, i32) {
    %c0_i32 = arith.constant 0 : i32
    %c0_i32_0 = arith.constant 0 : i32
    return %arg0, %c0_i32 : i32, i32
  }
  func.func @transform_1(%arg0: i32) -> (i32, i32) {
    %c0_i32 = arith.constant 0 : i32
    %c0_i32_0 = arith.constant 0 : i32
    %c0_i32_1 = arith.constant 0 : i32
    return %c0_i32, %c0_i32_0 : i32, i32
  }
  func.func @transform_2(%arg0: i32) -> (i32, i32) {
    %c0_i32 = arith.constant 0 : i32
    %c0_i32_0 = arith.constant 0 : i32
    %c0_i32_1 = arith.constant 0 : i32
    return %c0_i32, %c0_i32_0 : i32, i32
  }
  func.func @transform_3(%arg0: i32) -> (i32, i32) {
    %c0_i32 = arith.constant 0 : i32
    %c0_i32_0 = arith.constant 0 : i32
    %c0_i32_1 = arith.constant 0 : i32
    return %c0_i32, %c0_i32_0 : i32, i32
  }
  func.func @transform_4(%arg0: i32) -> (i32, i32) {
    %c0_i32 = arith.constant 0 : i32
    %c0_i32_0 = arith.constant 0 : i32
    %c0_i32_1 = arith.constant 0 : i32
    return %c0_i32, %c0_i32_0 : i32, i32
  }
  func.func @transform_5(%arg0: i32) -> (i32, i32) {
    %c0_i32 = arith.constant 0 : i32
    %c0_i32_0 = arith.constant 0 : i32
    return %arg0, %c0_i32 : i32, i32
  }
}

</mosaic_0001>

<bundles_post_ra>
// kernel: tpu_custom_call.1
= control target key start
LH: loop header
LB: loop body
LE: loop exit
PB: predicated region body
PF: predicated region fallthrough
CT: control target
= control target key end

     0   :  { %10 = vsyncpa [#allocation3], 0  ;;  %s581_s0 = inlined_call_operand.hbm [shape: f32[8,36], index: 0, kind: input, shape index: {}]   ;;  %s582_s1 = inlined_call_operand.hbm [shape: f32[36,256], index: 1, kind: input, shape index: {}]   ;;  %s583_s2 = inlined_call_operand.vmem [shape: f32[1,256], index: 2, kind: input, shape index: {}]   ;;  %s584_s3 = inlined_call_operand.hbm [shape: f32[256,128], index: 3, kind: input, shape index: {}]   ;;  %s585_s4 = inlined_call_operand.vmem [shape: f32[1,128], index: 4, kind: input, shape index: {}]   ;;  %s586_s5 = inlined_call_operand.hbm [shape: f32[8,128], index: 5, kind: output, shape index: {}]  }
   0x1   :  { %11 = vsyncpa [#allocation6], 0 }
   0x2   :  { %12 = vsyncpa [#allocation4], 0  ;;  %s486_s18 = smov [#allocation5]   ;;  %s392_s22 = scalar_lea.hbm %s582_s1, 1280 }
   0x3   :  { %s28_s19 = sshll.u32 %s486_s18, 4  ;;  %p393_p0 = scmp.ne.s32.totalorder %s582_s1, %s392_s22  ;;  %s29_s19 = int_to_ptr.vmem [resolvable:$true] %s28_s19 }
   0x4   :  { %p396_p1 = scmp.lt.u32.totalorder %s392_s22, %s582_s1 }
   0x6   :  { %p398_p2 = pnand %p396_p1, %p393_p0 }
   0x8   :  { %401 = shalt.err (!%p398_p2)
}
   0x9   :  { %s402_s27 = scalar_lea.vmem %s29_s19, 1280  ;;  %p407_p4 = scmp.lt.s32.totalorder %s29_s19, %s29_s19 }
   0xa   :  { %p403_p3 = scmp.ne.s32.totalorder %s29_s19, %s402_s27  ;;  %p408_p5 = scmp.lt.s32.totalorder %s402_s27, %s402_s27 }
   0xc   :  { %p409_p6 = por %p408_p5, %p407_p4 }
   0xe   :  { %p410_p7 = pnand %p409_p6, %p403_p3 }
  0x10   :  { %413 = shalt.err (!%p410_p7)
}
  0x11   :  { %s487_s28 = smov 256   ;;  %s488_s29 = smov 16  }
  0x12   :  { %34 = dma.hbm_to_vmem [thread:$0]  %s582_s1, 1280, %s29_s19, [#allocation6], %s487_s28, %s487_s28, %s488_s29  }
  0x13   :  { %s489_s7 = smov [#allocation2]   ;;  %s490_s9 = smov [#allocation7]  }
  0x14   :  { %s19_s8 = sshll.u32 %s489_s7, 4  ;;  %s42_s10 = sshll.u32 %s490_s9, 4  ;;  %s20_s8 = int_to_ptr.vmem [resolvable:$true] %s19_s8  ;;  %s43_s10 = int_to_ptr.vmem [resolvable:$true] %s42_s10 }
  0x15   :  { %s414_s13 = scalar_lea.hbm %s581_s0, 128 }
  0x16   :  { %p415_p8 = scmp.ne.s32.totalorder %s581_s0, %s414_s13  ;;  %p418_p9 = scmp.lt.u32.totalorder %s414_s13, %s581_s0 }
  0x18   :  { %p420_p10 = pnand %p418_p9, %p415_p8 }
  0x1a   :  { %423 = shalt.err (!%p420_p10)
}
  0x1b   :  { %s424_s1 = scalar_lea.vmem %s20_s8, 128  ;;  %p429_p12 = scmp.lt.s32.totalorder %s20_s8, %s20_s8 }
  0x1c   :  { %p425_p11 = scmp.ne.s32.totalorder %s20_s8, %s424_s1  ;;  %p430_p13 = scmp.lt.s32.totalorder %s424_s1, %s424_s1 }
  0x1e   :  { %p431_p0 = por %p430_p13, %p429_p12 }
  0x20   :  { %p432_p1 = pnand %p431_p0, %p425_p11 }
  0x22   :  { %435 = shalt.err (!%p432_p1)
}
  0x23   :  { %22 = dma.hbm_to_vmem [thread:$0]  %s581_s0, 128, %s20_s8, [#allocation3]  }
  0x24   :  { %s436_s22 = scalar_lea.hbm %s584_s3, 4096 }
  0x25   :  { %p437_p2 = scmp.ne.s32.totalorder %s584_s3, %s436_s22  ;;  %p440_p3 = scmp.lt.u32.totalorder %s436_s22, %s584_s3 }
  0x27   :  { %p442_p4 = pnand %p440_p3, %p437_p2 }
  0x29   :  { %445 = shalt.err (!%p442_p4)
}
  0x2a   :  { %s446_s27 = scalar_lea.vmem %s43_s10, 4096  ;;  %p451_p6 = scmp.lt.s32.totalorder %s43_s10, %s43_s10 }
  0x2b   :  { %p447_p5 = scmp.ne.s32.totalorder %s43_s10, %s446_s27  ;;  %p452_p7 = scmp.lt.s32.totalorder %s446_s27, %s446_s27 }
  0x2d   :  { %p453_p8 = por %p452_p7, %p451_p6 }
  0x2f   :  { %p454_p9 = pnand %p453_p8, %p447_p5 }
  0x31   :  { %457 = shalt.err (!%p454_p9)
}
  0x32   :  { %s491_s0 = smov 128   ;;  %s492_s28 = smov 8  }
  0x33   :  { %48 = dma.hbm_to_vmem [thread:$0]  %s584_s3, 4096, %s43_s10, [#allocation6], %s491_s0, %s491_s0, %s492_s28  }
  0x34   :  { %480 = dma.done.wait [#allocation3], 128  }
  0x35   :  { %481 = vsyncadd [#allocation3], 4294967168 }
  0x36   :  { %482 = dma.done.wait [#allocation6], 5376  }
  0x37   :  { %483 = vsyncadd [#allocation6], 4294961920  ;;  %v493_v0 = vmov 0.0   ;;  %v62_v1 = vld [vmem:[#allocation5 + $0x8] sm:$0xff]  ;;  %v64_v2 = vld [vmem:[#allocation5 + $0x18] sm:$0xff]  ;;  %vm87_vm0 = vcmask 1043456  }
  0x38   :  { %158 = vmatprep.mubr.f32.mxu0 %v493_v0  ;;  %v61_v3 = vld [vmem:[#allocation5] sm:$0xff]  ;;  %v339_v4 = vpack.c.bf16 %v64_v2, %v62_v1  ;;  %v63_v5 = vld [vmem:[#allocation5 + $0x10] sm:$0xff]  ;;  %v66_v6 = vld [vmem:[#allocation5 + $0x28] sm:$0xff]  ;;  %vm83_vm1 = vcmask 293888   ;;  %v73_v0 = vlaneseq }
  0x39   :  { %v68_v7 = vld [vmem:[#allocation5 + $0x38] sm:$0xff]  ;;  %v341_v8 = vpack.c.bf16 %v63_v5, %v61_v3  ;;  %v65_v10 = vld [vmem:[#allocation5 + $0x20] sm:$0xff]  ;;  %v67_v11 = vld [vmem:[#allocation5 + $0x30] sm:$0xff] }
  0x3a   :  { %v343_v9 = vpack.c.bf16 %v68_v7, %v66_v6  ;;  %340 = vmatprep.subr.bf16.mxu0 %v339_v4  ;;  %v183_v12 = vld [vmem:[#allocation7 + $0x80] sm:$0xff]  ;;  %v345_v13 = vpack.c.bf16 %v67_v11, %v65_v10  ;;  %v70_v14 = vld [vmem:[#allocation5 + $0x48] sm:$0xf]  ;;  %v184_v15 = vld [vmem:[#allocation7 + $0x88] sm:$0xff]  ;;  %v74_v1 = vshrl.u32 %v73_v0, 7 }
  0x3b   :  { %342 = vmatpush1.bf16.msra.mxu0 %v341_v8  ;;  %v167_v16 = vld [vmem:[#allocation7] sm:$0xff]  ;;  %v168_v17 = vld [vmem:[#allocation7 + $0x8] sm:$0xff]  ;;  %v347_v18 = vpack.c.bf16 %v184_v15, %v183_v12  ;;  %v185_v20 = vld [vmem:[#allocation7 + $0x90] sm:$0xff] }
  0x3c   :  { %344 = vmatprep.subr.bf16.mxu0 %v343_v9  ;;  %v349_v19 = vpack.c.bf16 %v168_v17, %v167_v16  ;;  %v186_v21 = vld [vmem:[#allocation7 + $0x98] sm:$0xff]  ;;  %v169_v22 = vld [vmem:[#allocation7 + $0x10] sm:$0xff]  ;;  %v187_v25 = vld [vmem:[#allocation7 + $0xa0] sm:$0xff]  ;;  %v75_v2 = vsub.s32 0, %v74_v1  ;;  %v79_v4 = vsub.s32 1, %v74_v1 }
  0x3d   :  { %v351_v23 = vpack.c.bf16 %v186_v21, %v185_v20  ;;  %v170_v24 = vld [vmem:[#allocation7 + $0x18] sm:$0xff]  ;;  %v188_v26 = vld [vmem:[#allocation7 + $0xa8] sm:$0xff]  ;;  %348 = vmatprep.subr.bf16.mxu1 %v347_v18  ;;  %v69_v28 = vld [vmem:[#allocation5 + $0x40] sm:$0xf] }
  0x3e   :  { %350 = vmatpush3.bf16.msra.mxu1 %v349_v19  ;;  %v353_v27 = vpack.c.bf16 %v170_v24, %v169_v22  ;;  %v355_v29 = vpack.c.bf16 %v188_v26, %v187_v25  ;;  %v171_v30 = vld [vmem:[#allocation7 + $0x20] sm:$0xff]  ;;  %v172_v31 = vld [vmem:[#allocation7 + $0x28] sm:$0xff]  ;;  %v189_v33 = vld [vmem:[#allocation7 + $0xb0] sm:$0xff] }
  0x3f   :  { %346 = vmatpush1.bf16.msra.mxu0 %v345_v13  ;;  %352 = vmatprep.subr.bf16.mxu1 %v351_v23  ;;  %v60_v32 = vld [vmem:[#allocation2] sm:$0xff]  ;;  %v190_v34 = vld [vmem:[#allocation7 + $0xb8] sm:$0xff]  ;;  %v357_v35 = vpack.c.bf16 %v172_v31, %v171_v30  ;;  %v173_v37 = vld [vmem:[#allocation7 + $0x30] sm:$0xff] }
  0x40   :  { %299 = vmatprep.subr.msk.mxu0 %vm87_vm0, %v70_v14  ;;  %v359_v36 = vpack.c.bf16 %v190_v34, %v189_v33  ;;  %v174_v38 = vld [vmem:[#allocation7 + $0x38] sm:$0xff]  ;;  %v191_v39 = vld [vmem:[#allocation7 + $0xc0] sm:$0xff]  ;;  %v192_v40 = vld [vmem:[#allocation7 + $0xc8] sm:$0xff] }
  0x41   :  { %v361_v41 = vpack.c.bf16 %v174_v38, %v173_v37  ;;  %v363_v42 = vpack.c.bf16 %v192_v40, %v191_v39  ;;  %v175_v43 = vld [vmem:[#allocation7 + $0x40] sm:$0xff]  ;;  %v176_v44 = vld [vmem:[#allocation7 + $0x48] sm:$0xff]  ;;  %v193_v45 = vld [vmem:[#allocation7 + $0xd0] sm:$0xff] }
  0x42   :  { %354 = vmatpush3.bf16.msra.mxu1 %v353_v27  ;;  %v194_v46 = vld [vmem:[#allocation7 + $0xd8] sm:$0xff]  ;;  %v365_v47 = vpack.c.bf16 %v176_v44, %v175_v43  ;;  %v177_v49 = vld [vmem:[#allocation7 + $0x50] sm:$0xff]  ;;  %v195_v51 = vld [vmem:[#allocation7 + $0xe0] sm:$0xff] }
  0x43   :  { %300 = vmatpush1.msk.msra.mxu0 %vm87_vm0, %v69_v28  ;;  %356 = vmatprep.subr.bf16.mxu1 %v355_v29  ;;  %v367_v48 = vpack.c.bf16 %v194_v46, %v193_v45  ;;  %v178_v50 = vld [vmem:[#allocation7 + $0x58] sm:$0xff]  ;;  %v196_v52 = vld [vmem:[#allocation7 + $0xe8] sm:$0xff]  ;;  %v179_v55 = vld [vmem:[#allocation7 + $0x60] sm:$0xff] }
  0x44   :  { %301 = vmatmul.mubr.msk.f32.vlgmr.msra.gmra.mrb[0].mxu0 %vm83_vm1, %v60_v32  ;;  %v369_v53 = vpack.c.bf16 %v178_v50, %v177_v49  ;;  %v371_v54 = vpack.c.bf16 %v196_v52, %v195_v51  ;;  %v180_v56 = vld [vmem:[#allocation7 + $0x68] sm:$0xff]  ;;  %v197_v58 = vld [vmem:[#allocation7 + $0xf0] sm:$0xff]  ;;  %v198_v59 = vld [vmem:[#allocation7 + $0xf8] sm:$0xff] }
  0x45   :  { %v373_v57 = vpack.c.bf16 %v180_v56, %v179_v55  ;;  %v375_v60 = vpack.c.bf16 %v198_v59, %v197_v58  ;;  %v181_v61 = vld [vmem:[#allocation7 + $0x70] sm:$0xff]  ;;  %v182_v62 = vld [vmem:[#allocation7 + $0x78] sm:$0xff]  ;;  %v71_v3 = vld [vmem:[%s583_s2] sm:$0x3]  ;;  %s494_s2 = smov [#allocation8]  }
  0x46   :  { %358 = vmatpush3.bf16.msra.mxu1 %v357_v35  ;;  %v377_v63 = vpack.c.bf16 %v182_v62, %v181_v61  ;;  %v76_v5 = vrot.slane %v71_v3, %v75_v2  ;;  %v80_v6 = vrot.slane %v71_v3, %v79_v4  ;;  %v302_v14 = vld [vmem:[%s585_s4] ss:$0 sm:$0xff]  ;;  %s289_s9 = sshll.u32 %s494_s2, 4  ;;  %s290_s9 = int_to_ptr.vmem [resolvable:$true] %s289_s9 }
  0x47   :  { %360 = vmatprep.subr.bf16.mxu1 %v359_v36  ;;  %s458_s10 = scalar_lea.vmem %s290_s9, 128  ;;  %p463_p11 = scmp.lt.s32.totalorder %s290_s9, %s290_s9 }
  0x48   :  { %p459_p10 = scmp.ne.s32.totalorder %s290_s9, %s458_s10  ;;  %p464_p12 = scmp.lt.s32.totalorder %s458_s10, %s458_s10 }
  0x4a   :  { %362 = vmatpush3.bf16.msra.mxu1 %v361_v41  ;;  %p465_p13 = por %p464_p12, %p463_p11 }
  0x4b   :  { %364 = vmatprep.subr.bf16.mxu1 %v363_v42 }
  0x4c   :  { %p466_p0 = pnand %p465_p13, %p459_p10 }
  0x4e   :  { %366 = vmatpush3.bf16.msra.mxu1 %v365_v47 }
  0x4f   :  { %368 = vmatprep.subr.bf16.mxu1 %v367_v48 }
  0x52   :  { %370 = vmatpush3.bf16.msra.mxu1 %v369_v53 }
  0x53   :  { %372 = vmatprep.subr.bf16.mxu1 %v371_v54 }
  0x56   :  { %374 = vmatpush3.bf16.msra.mxu1 %v373_v57 }
  0x57   :  { %376 = vmatprep.subr.bf16.mxu1 %v375_v60 }
  0x5a   :  { %378 = vmatpush3.bf16.msra.mxu1 %v377_v63 }
 0x117   :  { %v160_v7 = vpop.f32.mrb[0].mxu0 }
 0x118   :  { %v161_v8 = vadd.f32 %v160_v7, %v76_v5  ;;  %v162_v9 = vpop.f32.mrb[1].mxu0 }
 0x119   :  { %v163_v10 = vadd.f32 %v162_v9, %v80_v6 }
 0x11a   :  { %v165_v12 = vmax.f32 %v161_v8, 0.0 }
 0x11b   :  { %v166_v11 = vmax.f32 %v163_v10, 0.0 }
 0x11d   :  { %270 = vmatprep.mubr.f32.mxu1 %v166_v11 }
 0x11e   :  { %271 = vmatmul.mubr.f32.vlgmr.msra.gmra.mrb[0].mxu1 %v165_v12 }
 0x1f1   :  { %v336_v13 = vpop.f32.mrb[0].mxu1 }
 0x1f2   :  { %v337_v15 = vpop.f32.mrb[1].mxu1 }
 0x1f3   :  { %v338_v16 = vadd.f32 %v337_v15, %v336_v13 }
 0x1f5   :  { %v273_v17 = vadd.f32 %v338_v16, %v302_v14 }
 0x1f7   :  { %v303_v18 = vmul.f32 -1.442695, %v273_v17 }
 0x1f9   :  { %388 = vpow2.f32 %v303_v18 }
 0x203   :  { %v389_v19 = vpop.eup %388 }
 0x204   :  { %v279_v20 = vadd.f32 1.0, %v389_v19 }
 0x206   :  { %390 = vrcp.f32 %v279_v20 }
 0x210   :  { %v391_v21 = vpop.eup %390 }
 0x211   :  { %282 = vst [vmem:[#allocation8] sm:$0xff] %v391_v21 }
 0x212   :  { %469 = shalt.err (!%p466_p0)
}
 0x213   :  { %s470_s12 = scalar_lea.hbm %s586_s5, 128 }
 0x214   :  { %p471_p1 = scmp.ne.s32.totalorder %s586_s5, %s470_s12  ;;  %p474_p2 = scmp.lt.u32.totalorder %s470_s12, %s586_s5 }
 0x216   :  { %p476_p3 = pnand %p474_p2, %p471_p1 }
 0x218   :  { %479 = shalt.err (!%p476_p3)
}
 0x219   :  { %292 = dma.vmem_to_hbm [thread:$0]  %s290_s9, 128, %s586_s5, [#allocation4]  }
 0x21a   :  { %484 = dma.done.wait [#allocation4], 128  }
 0x21b   :  { %485 = vsyncadd [#allocation4], 4294967168 }
 0x21c   :  { %296 = vsyncpa [#allocation3], 1 }
 0x21d   :  { %297 = vsyncpa [#allocation6], 1 }
 0x21e   :  { %298 = vsyncpa [#allocation4], 1 }

</bundles_post_ra>
